<compile_context>
chip_gen: v7x
topology: tpu7x:2x2x1
jax: 0.10.0
libtpu: 0.0.40
codegen_flags: <defaults>
</compile_context>

<pallas_src>
import jax
import jax.numpy as jnp
from jax.experimental import pallas as pl
from jax.experimental.pallas import tpu as pltpu

HIDDEN_1 = 400
HIDDEN_2 = 300
H1_PAD = 512          # 400 -> 512  (multiple of 128 lanes)
H2_PAD = 384          # 300 -> 384  (3 clean passes on v5e's 128-wide MXU; try 512 on v6e/v7x)
HEAD_PAD = 128        # fused mean|std_log head padded to one lane-dense vreg width
STD_MIN = -20.0
STD_MAX = 2.0
INIT_W = 0.003
TILE_B = 1024         # primary tuning knob (review: 512-2048 amortizes ~0.35us/step overhead)
MAX_TILE_B = 2048     # fits v5e's 16 MiB default scoped VMEM; raise vmem_limit_bytes to go bigger


def actor_fwd_kernel(x_ref, w1_ref, b1_ref, w2_ref, b2_ref, wh_ref, bh_ref,
                     std_mask_ref, out_ref):
    # x: (tile_b, state_dim) f32 -> bf16 for the MXU; accumulate in f32.
    x = x_ref[...].astype(jnp.bfloat16)

    # h1 = relu(x @ W1 + b1), materialized as bf16 (halves spill bytes between matmuls).
    h1 = jnp.maximum(
        jnp.dot(x, w1_ref[...], preferred_element_type=jnp.float32) + b1_ref[...],
        0.0).astype(jnp.bfloat16)

    # h2 = relu(h1 @ W2 + b2), kept f32 to feed the f32 head matmul.
    h2 = jnp.maximum(
        jnp.dot(h1, w2_ref[...], preferred_element_type=jnp.float32) + b2_ref[...],
        0.0)

    # Fused head (f32 weights; tiny matmul, preserves policy-mean precision):
    #   y[:, :A] = mean, y[:, A:2A] = std_log, rest zero padding.
    y = jnp.dot(h2, wh_ref[...], preferred_element_type=jnp.float32) + bh_ref[...]

    # Clamp only the std_log half via the precomputed VMEM-resident column mask.
    y = jnp.where(std_mask_ref[...] != 0.0, jnp.clip(y, STD_MIN, STD_MAX), y)

    out_ref[...] = y.astype(out_ref.dtype)


def _round_up(x, m):
    return ((x + m - 1) // m) * m


def _choose_tiling(batch, tile_b):
    """Pick (b_pad, tile): right-size tiny batches, prefer 2 even steps for v7x megacore,
    cap the tile so default scoped VMEM is enough on all generations."""
    tile_b = min(max(int(tile_b), 8), MAX_TILE_B)
    b_min = _round_up(max(batch, 1), 8)
    if b_min <= tile_b:
        if b_min >= 16:
            half = _round_up(pl.cdiv(b_min, 2), 8)
            return 2 * half, half            # two even steps -> both v7x TensorCores busy
        return b_min, b_min                  # single tiny step (per-step RL action path)
    return _round_up(batch, tile_b), tile_b


def actor_forward(state, packed, action_dim, tile_b=TILE_B):
    """state: (B, state_dim) f32. packed: dict from pack_params().
    Returns (mean, std_log_clipped) — std_log is the clipped log-std, as in the reference."""
    assert 2 * action_dim <= HEAD_PAD, "fused head supports action_dim <= 64"
    B, state_dim = state.shape
    b_pad, tile = _choose_tiling(B, tile_b)
    if b_pad != B:
        state = jnp.pad(state, ((0, b_pad - B), (0, 0)))

    const = lambda i: (0, 0)   # weights/biases/mask: VMEM-resident across batch tiles

    flops = 2 * b_pad * (state_dim * H1_PAD + H1_PAD * H2_PAD + H2_PAD * HEAD_PAD)
    bytes_accessed = (b_pad * state_dim * 4                 # input
                      + packed["w1"].size * 2 + packed["w2"].size * 2
                      + packed["wh"].size * 4
                      + (H1_PAD + H2_PAD + 2 * HEAD_PAD) * 4  # biases + mask
                      + b_pad * HEAD_PAD * 4)               # output

    out = pl.pallas_call(
        actor_fwd_kernel,
        out_shape=jax.ShapeDtypeStruct((b_pad, HEAD_PAD), jnp.float32),
        grid_spec=pltpu.PrefetchScalarGridSpec(
            num_scalar_prefetch=0,
            grid=(b_pad // tile,),
            in_specs=[
                pl.BlockSpec((tile, state_dim), lambda i: (i, 0)),
                pl.BlockSpec((state_dim, H1_PAD), const),
                pl.BlockSpec((1, H1_PAD), const),
                pl.BlockSpec((H1_PAD, H2_PAD), const),
                pl.BlockSpec((1, H2_PAD), const),
                pl.BlockSpec((H2_PAD, HEAD_PAD), const),
                pl.BlockSpec((1, HEAD_PAD), const),
                pl.BlockSpec((1, HEAD_PAD), const),
            ],
            out_specs=pl.BlockSpec((tile, HEAD_PAD), lambda i: (i, 0)),
        ),
        compiler_params=pltpu.CompilerParams(
            dimension_semantics=("parallel",)),
        cost_estimate=pl.CostEstimate(flops=flops, transcendentals=0,
                                      bytes_accessed=bytes_accessed),
    )(state, packed["w1"], packed["b1"], packed["w2"], packed["b2"],
      packed["wh"], packed["bh"], packed["std_mask"])

    mean = out[:B, :action_dim]
    std_log = out[:B, action_dim:2 * action_dim]
    return mean, std_log


def init_params(key, state_dim, action_dim):
    """Synthetic init mirroring the PyTorch module: l1/l2 ~ U(-1/sqrt(fan_in), 1/sqrt(fan_in)),
    mean/std_log heads ~ U(-init_w, init_w). Weights stored (in_features, out_features)."""
    ks = jax.random.split(key, 8)

    def uni(k, shape, bound):
        return jax.random.uniform(k, shape, jnp.float32, -bound, bound)

    bound1 = 1.0 / jnp.sqrt(state_dim)
    bound2 = 1.0 / jnp.sqrt(HIDDEN_1)
    return {
        "w1_t": uni(ks[0], (state_dim, HIDDEN_1), bound1),
        "b1":   uni(ks[1], (1, HIDDEN_1), bound1),
        "w2_t": uni(ks[2], (HIDDEN_1, HIDDEN_2), bound2),
        "b2":   uni(ks[3], (1, HIDDEN_2), bound2),
        "wm_t": uni(ks[4], (HIDDEN_2, action_dim), INIT_W),
        "bm":   uni(ks[5], (1, action_dim), INIT_W),
        "ws_t": uni(ks[6], (HIDDEN_2, action_dim), INIT_W),
        "bs":   uni(ks[7], (1, action_dim), INIT_W),
    }


def pack_params(p, state_dim, action_dim):
    """Pad hidden dims to lane multiples, fuse the two heads, cast l1/l2 weights to bf16.
    Head weights/bias stay f32 (policy-mean precision). All padding is zero-filled, so the
    forward pass is numerically exact up to bf16 rounding of w1/w2."""
    assert 2 * action_dim <= HEAD_PAD, "fused head supports action_dim <= 64"
    A = action_dim
    w1 = jnp.zeros((state_dim, H1_PAD), jnp.float32).at[:, :HIDDEN_1].set(p["w1_t"])
    b1 = jnp.zeros((1, H1_PAD), jnp.float32).at[:, :HIDDEN_1].set(p["b1"])
    w2 = jnp.zeros((H1_PAD, H2_PAD), jnp.float32).at[:HIDDEN_1, :HIDDEN_2].set(p["w2_t"])
    b2 = jnp.zeros((1, H2_PAD), jnp.float32).at[:, :HIDDEN_2].set(p["b2"])
    wh = (jnp.zeros((H2_PAD, HEAD_PAD), jnp.float32)
          .at[:HIDDEN_2, :A].set(p["wm_t"])
          .at[:HIDDEN_2, A:2 * A].set(p["ws_t"]))
    bh = (jnp.zeros((1, HEAD_PAD), jnp.float32)
          .at[:, :A].set(p["bm"])
          .at[:, A:2 * A].set(p["bs"]))
    col = jnp.arange(HEAD_PAD)
    std_mask = ((col >= A) & (col < 2 * A)).astype(jnp.float32)[None, :]
    return {
        "w1": w1.astype(jnp.bfloat16), "b1": b1,
        "w2": w2.astype(jnp.bfloat16), "b2": b2,
        "wh": wh, "bh": bh,
        "std_mask": std_mask,
    }


def actor_forward_matched_ref(state, packed, action_dim):
    """Pure-JAX reference matching the kernel's bf16-weight / f32-accumulate arithmetic."""
    x = state.astype(jnp.bfloat16)
    h1 = jnp.maximum(jnp.dot(x, packed["w1"], preferred_element_type=jnp.float32)
                     + packed["b1"], 0.0).astype(jnp.bfloat16)
    h2 = jnp.maximum(jnp.dot(h1, packed["w2"], preferred_element_type=jnp.float32)
                     + packed["b2"], 0.0)
    y = jnp.dot(h2, packed["wh"], preferred_element_type=jnp.float32) + packed["bh"]
    mean = y[:, :action_dim]
    std_log = jnp.clip(y[:, action_dim:2 * action_dim], STD_MIN, STD_MAX)
    return mean, std_log


def actor_forward_spec_ref(state, p):
    """Full-f32 reference of the original module semantics."""
    h1 = jax.nn.relu(state @ p["w1_t"] + p["b1"])
    h2 = jax.nn.relu(h1 @ p["w2_t"] + p["b2"])
    mean = h2 @ p["wm_t"] + p["bm"]
    std_log = jnp.clip(h2 @ p["ws_t"] + p["bs"], STD_MIN, STD_MAX)
    return mean, std_log


if __name__ == "__main__":
    key = jax.random.PRNGKey(0)
    k_param, k_state, k_state2 = jax.random.split(key, 3)

    batch = 2
    state_dim = 16
    action_dim = 4

    params = init_params(k_param, state_dim, action_dim)
    packed = pack_params(params, state_dim, action_dim)

    # Tiny-batch path (per-step RL action): padded only to 8 rows, single grid step.
    state = jax.random.normal(k_state, (batch, state_dim), jnp.float32)
    mean, std_log = actor_forward(state, packed, action_dim)
    jax.block_until_ready((mean, std_log))
    assert mean.shape == (batch, action_dim) and std_log.shape == (batch, action_dim)

    m_ref, s_ref = actor_forward_matched_ref(state, packed, action_dim)
    assert jnp.allclose(mean, m_ref, atol=1e-3, rtol=1e-3), "mismatch vs bf16-matched reference"
    assert jnp.allclose(std_log, s_ref, atol=1e-3, rtol=1e-3), "mismatch vs bf16-matched reference"

    m_f32, s_f32 = actor_forward_spec_ref(state, params)
    assert jnp.allclose(mean, m_f32, atol=5e-2, rtol=5e-2), "drift vs f32 spec reference"
    assert jnp.allclose(std_log, s_f32, atol=5e-2, rtol=5e-2), "drift vs f32 spec reference"

    # Moderate-batch path: exercises padding + the 2-even-step (megacore) grid.
    batch2 = 100
    state2 = jax.random.normal(k_state2, (batch2, state_dim), jnp.float32)
    mean2, std_log2 = actor_forward(state2, packed, action_dim)
    jax.block_until_ready((mean2, std_log2))
    assert mean2.shape == (batch2, action_dim) and std_log2.shape == (batch2, action_dim)
    m2_ref, s2_ref = actor_forward_matched_ref(state2, packed, action_dim)
    assert jnp.allclose(mean2, m2_ref, atol=1e-3, rtol=1e-3), "mismatch vs bf16-matched reference"
    assert jnp.allclose(std_log2, s2_ref, atol=1e-3, rtol=1e-3), "mismatch vs bf16-matched reference"

    # TODO(synk): evaluate()/get_action() (Normal sampling, tanh squash, log_prob) are stochastic
    # host-side glue in the reference module; only forward() is implemented as the kernel hot path.

    print("KERNEL_OK")
</pallas_src>

<mosaic_0001>
module attributes {stable_mosaic.version = 11 : i64} {
  func.func @actor_fwd_kernel(%arg0: i32, %arg1: memref<8x16xf32, #tpu.memory_space<vmem>>, %arg2: memref<16x512xbf16, #tpu.memory_space<vmem>>, %arg3: memref<1x512xf32, #tpu.memory_space<vmem>>, %arg4: memref<512x384xbf16, #tpu.memory_space<vmem>>, %arg5: memref<1x384xf32, #tpu.memory_space<vmem>>, %arg6: memref<384x128xf32, #tpu.memory_space<vmem>>, %arg7: memref<1x128xf32, #tpu.memory_space<vmem>>, %arg8: memref<1x128xf32, #tpu.memory_space<vmem>>, %arg9: memref<8x128xf32, #tpu.memory_space<vmem>>) attributes {dimension_semantics = [#tpu.dimension_semantics<parallel>], iteration_bounds = array<i64: 1>, scalar_prefetch = 0 : i64, scratch_operands = 0 : i64, tpu.core_type = #tpu.core_type<tc>, window_params = [{transform_indices = @transform_0, window_bounds = array<i64: 8, 16>}, {pipeline_mode = #tpu.pipeline_mode<synchronous>, transform_indices = @transform_1, window_bounds = array<i64: 16, 512>}, {pipeline_mode = #tpu.pipeline_mode<synchronous>, transform_indices = @transform_2, window_bounds = array<i64: 1, 512>}, {pipeline_mode = #tpu.pipeline_mode<synchronous>, transform_indices = @transform_3, window_bounds = array<i64: 512, 384>}, {pipeline_mode = #tpu.pipeline_mode<synchronous>, transform_indices = @transform_4, window_bounds = array<i64: 1, 384>}, {pipeline_mode = #tpu.pipeline_mode<synchronous>, transform_indices = @transform_5, window_bounds = array<i64: 384, 128>}, {pipeline_mode = #tpu.pipeline_mode<synchronous>, transform_indices = @transform_6, window_bounds = array<i64: 1, 128>}, {pipeline_mode = #tpu.pipeline_mode<synchronous>, transform_indices = @transform_7, window_bounds = array<i64: 1, 128>}, {transform_indices = @transform_8, window_bounds = array<i64: 8, 128>}]} {
    %c0 = arith.constant 0 : index
    %c0_0 = arith.constant 0 : index
    %0 = vector.load %arg1[%c0, %c0_0] : memref<8x16xf32, #tpu.memory_space<vmem>>, vector<8x16xf32>
    %1 = arith.truncf %0 : vector<8x16xf32> to vector<8x16xbf16>
    %c0_1 = arith.constant 0 : index
    %c0_2 = arith.constant 0 : index
    %2 = vector.load %arg2[%c0_1, %c0_2] : memref<16x512xbf16, #tpu.memory_space<vmem>>, vector<16x512xbf16>
    %cst = arith.constant dense<0.000000e+00> : vector<8x512xf32>
    %3 = tpu.matmul %1, %2, %cst {dimension_numbers = #tpu.dot_dimension_numbers<[1], [0], [0], [1], [0, 0, 1, 1], [], []>} : vector<8x16xbf16>, vector<16x512xbf16>, vector<8x512xf32> -> vector<8x512xf32>
    %c0_3 = arith.constant 0 : index
    %c0_4 = arith.constant 0 : index
    %4 = vector.load %arg3[%c0_3, %c0_4] : memref<1x512xf32, #tpu.memory_space<vmem>>, vector<1x512xf32>
    %5 = vector.broadcast %4 : vector<1x512xf32> to vector<8x512xf32>
    %6 = arith.addf %3, %5 : vector<8x512xf32>
    %cst_5 = arith.constant 0.000000e+00 : f32
    %7 = vector.broadcast %cst_5 : f32 to vector<8x512xf32>
    %8 = arith.maximumf %6, %7 : vector<8x512xf32>
    %9 = arith.truncf %8 : vector<8x512xf32> to vector<8x512xbf16>
    %c0_6 = arith.constant 0 : index
    %c0_7 = arith.constant 0 : index
    %10 = vector.load %arg4[%c0_6, %c0_7] : memref<512x384xbf16, #tpu.memory_space<vmem>>, vector<512x384xbf16>
    %cst_8 = arith.constant dense<0.000000e+00> : vector<8x384xf32>
    %11 = tpu.matmul %9, %10, %cst_8 {dimension_numbers = #tpu.dot_dimension_numbers<[1], [0], [0], [1], [0, 0, 1, 1], [], []>} : vector<8x512xbf16>, vector<512x384xbf16>, vector<8x384xf32> -> vector<8x384xf32>
    %c0_9 = arith.constant 0 : index
    %c0_10 = arith.constant 0 : index
    %12 = vector.load %arg5[%c0_9, %c0_10] : memref<1x384xf32, #tpu.memory_space<vmem>>, vector<1x384xf32>
    %13 = vector.broadcast %12 : vector<1x384xf32> to vector<8x384xf32>
    %14 = arith.addf %11, %13 : vector<8x384xf32>
    %cst_11 = arith.constant 0.000000e+00 : f32
    %15 = vector.broadcast %cst_11 : f32 to vector<8x384xf32>
    %16 = arith.maximumf %14, %15 : vector<8x384xf32>
    %c0_12 = arith.constant 0 : index
    %c0_13 = arith.constant 0 : index
    %17 = vector.load %arg6[%c0_12, %c0_13] : memref<384x128xf32, #tpu.memory_space<vmem>>, vector<384x128xf32>
    %cst_14 = arith.constant dense<0.000000e+00> : vector<8x128xf32>
    %18 = tpu.matmul %16, %17, %cst_14 {dimension_numbers = #tpu.dot_dimension_numbers<[1], [0], [0], [1], [0, 0, 1, 1], [], []>} : vector<8x384xf32>, vector<384x128xf32>, vector<8x128xf32> -> vector<8x128xf32>
    %c0_15 = arith.constant 0 : index
    %c0_16 = arith.constant 0 : index
    %19 = vector.load %arg7[%c0_15, %c0_16] : memref<1x128xf32, #tpu.memory_space<vmem>>, vector<1x128xf32>
    %20 = vector.broadcast %19 : vector<1x128xf32> to vector<8x128xf32>
    %21 = arith.addf %18, %20 : vector<8x128xf32>
    %c0_17 = arith.constant 0 : index
    %c0_18 = arith.constant 0 : index
    %22 = vector.load %arg8[%c0_17, %c0_18] : memref<1x128xf32, #tpu.memory_space<vmem>>, vector<1x128xf32>
    %cst_19 = arith.constant 0.000000e+00 : f32
    %23 = vector.broadcast %cst_19 : f32 to vector<1x128xf32>
    %24 = arith.cmpf one, %22, %23 : vector<1x128xf32>
    %cst_20 = arith.constant -2.000000e+01 : f32
    %cst_21 = arith.constant 2.000000e+00 : f32
    %25 = vector.broadcast %cst_20 : f32 to vector<8x128xf32>
    %26 = arith.maximumf %25, %21 : vector<8x128xf32>
    %27 = vector.broadcast %cst_21 : f32 to vector<8x128xf32>
    %28 = arith.minimumf %27, %26 : vector<8x128xf32>
    %29 = vector.shape_cast %24 : vector<1x128xi1> to vector<1x128xi1>
    %30 = vector.broadcast %29 : vector<1x128xi1> to vector<8x128xi1>
    %31 = arith.select %30, %28, %21 : vector<8x128xi1>, vector<8x128xf32>
    %c0_22 = arith.constant 0 : index
    %c0_23 = arith.constant 0 : index
    %32 = vector.load %arg9[%c0_22, %c0_23] : memref<8x128xf32, #tpu.memory_space<vmem>>, vector<8x128xf32>
    tpu.vector_store %arg9[%c0_22, %c0_23], %31 {strides = array<i32>} : memref<8x128xf32, #tpu.memory_space<vmem>>, vector<8x128xf32>,
    return
  }
  func.func @transform_0(%arg0: i32) -> (i32, i32) {
    %c0_i32 = arith.constant 0 : i32
    %c0_i32_0 = arith.constant 0 : i32
    return %arg0, %c0_i32 : i32, i32
  }
  func.func @transform_1(%arg0: i32) -> (i32, i32) {
    %c0_i32 = arith.constant 0 : i32
    %c0_i32_0 = arith.constant 0 : i32
    %c0_i32_1 = arith.constant 0 : i32
    return %c0_i32, %c0_i32_0 : i32, i32
  }
  func.func @transform_2(%arg0: i32) -> (i32, i32) {
    %c0_i32 = arith.constant 0 : i32
    %c0_i32_0 = arith.constant 0 : i32
    %c0_i32_1 = arith.constant 0 : i32
    return %c0_i32, %c0_i32_0 : i32, i32
  }
  func.func @transform_3(%arg0: i32) -> (i32, i32) {
    %c0_i32 = arith.constant 0 : i32
    %c0_i32_0 = arith.constant 0 : i32
    %c0_i32_1 = arith.constant 0 : i32
    return %c0_i32, %c0_i32_0 : i32, i32
  }
  func.func @transform_4(%arg0: i32) -> (i32, i32) {
    %c0_i32 = arith.constant 0 : i32
    %c0_i32_0 = arith.constant 0 : i32
    %c0_i32_1 = arith.constant 0 : i32
    return %c0_i32, %c0_i32_0 : i32, i32
  }
  func.func @transform_5(%arg0: i32) -> (i32, i32) {
    %c0_i32 = arith.constant 0 : i32
    %c0_i32_0 = arith.constant 0 : i32
    %c0_i32_1 = arith.constant 0 : i32
    return %c0_i32, %c0_i32_0 : i32, i32
  }
  func.func @transform_6(%arg0: i32) -> (i32, i32) {
    %c0_i32 = arith.constant 0 : i32
    %c0_i32_0 = arith.constant 0 : i32
    %c0_i32_1 = arith.constant 0 : i32
    return %c0_i32, %c0_i32_0 : i32, i32
  }
  func.func @transform_7(%arg0: i32) -> (i32, i32) {
    %c0_i32 = arith.constant 0 : i32
    %c0_i32_0 = arith.constant 0 : i32
    %c0_i32_1 = arith.constant 0 : i32
    return %c0_i32, %c0_i32_0 : i32, i32
  }
  func.func @transform_8(%arg0: i32) -> (i32, i32) {
    %c0_i32 = arith.constant 0 : i32
    %c0_i32_0 = arith.constant 0 : i32
    return %arg0, %c0_i32 : i32, i32
  }
}

</mosaic_0001>

<bundles_post_ra>
// kernel: tpu_custom_call.1
= control target key start
LH: loop header
LB: loop body
LE: loop exit
PB: predicated region body
PF: predicated region fallthrough
CT: control target
= control target key end

     0   :  { %13 = vsyncpa [#allocation3], 0  ;;  %s2006_s0 = inlined_call_operand.hbm [shape: f32[8,16], index: 0, kind: input, shape index: {}]   ;;  %s2007_s1 = inlined_call_operand.hbm [shape: bf16[16,512], index: 1, kind: input, shape index: {}]   ;;  %s2008_s2 = inlined_call_operand.vmem [shape: f32[1,512], index: 2, kind: input, shape index: {}]   ;;  %s2009_s3 = inlined_call_operand.hbm [shape: bf16[512,384], index: 3, kind: input, shape index: {}]   ;;  %s2010_s4 = inlined_call_operand.vmem [shape: f32[1,384], index: 4, kind: input, shape index: {}]   ;;  %s2011_s5 = inlined_call_operand.hbm [shape: f32[384,128], index: 5, kind: input, shape index: {}]   ;;  %s2012_s6 = inlined_call_operand.vmem [shape: f32[1,128], index: 6, kind: input, shape index: {}]   ;;  %s2013_s7 = inlined_call_operand.vmem [shape: f32[1,128], index: 7, kind: input, shape index: {}]   ;;  %s2014_s8 = inlined_call_operand.hbm [shape: f32[8,128], index: 8, kind: output, shape index: {}]  }
   0x1   :  { %14 = vsyncpa [#allocation6], 0 }
   0x2   :  { %15 = vsyncpa [#allocation9], 0 }
   0x3   :  { %16 = vsyncpa [#allocation4], 0  ;;  %s1835_s27 = smov [#allocation5]   ;;  %s1717_s9 = scalar_lea.hbm %s2007_s1, 512 }
   0x4   :  { %s32_s28 = sshll.u32 %s1835_s27, 4  ;;  %p1718_p0 = scmp.ne.s32.totalorder %s2007_s1, %s1717_s9  ;;  %s33_s28 = int_to_ptr.vmem [resolvable:$true] %s32_s28 }
   0x5   :  { %p1721_p1 = scmp.lt.u32.totalorder %s1717_s9, %s2007_s1 }
   0x7   :  { %p1723_p2 = pnand %p1721_p1, %p1718_p0 }
   0x9   :  { %1726 = shalt.err (!%p1723_p2)
}
   0xa   :  { %s1727_s14 = scalar_lea.vmem %s33_s28, 512  ;;  %p1732_p4 = scmp.lt.s32.totalorder %s33_s28, %s33_s28 }
   0xb   :  { %p1728_p3 = scmp.ne.s32.totalorder %s33_s28, %s1727_s14  ;;  %p1733_p5 = scmp.lt.s32.totalorder %s1727_s14, %s1727_s14 }
   0xd   :  { %p1734_p6 = por %p1733_p5, %p1732_p4 }
   0xf   :  { %p1735_p7 = pnand %p1734_p6, %p1728_p3 }
  0x11   :  { %1738 = shalt.err (!%p1735_p7)
}
  0x12   :  { %s1836_s15 = smov 256   ;;  %s1837_s16 = smov 16  }
  0x13   :  { %38 = dma.hbm_to_vmem [thread:$0]  %s2007_s1, 512, %s33_s28, [#allocation6], %s1836_s15, %s1836_s15, %s1837_s16  }
  0x14   :  { %s1838_s19 = smov [#allocation2]   ;;  %s1839_s21 = smov [#allocation7]  }
  0x15   :  { %s23_s20 = sshll.u32 %s1838_s19, 4  ;;  %s46_s22 = sshll.u32 %s1839_s21, 4  ;;  %s24_s20 = int_to_ptr.vmem [resolvable:$true] %s23_s20  ;;  %s47_s22 = int_to_ptr.vmem [resolvable:$true] %s46_s22 }
  0x16   :  { %s1739_s25 = scalar_lea.hbm %s2006_s0, 128 }
  0x17   :  { %p1740_p8 = scmp.ne.s32.totalorder %s2006_s0, %s1739_s25  ;;  %p1743_p9 = scmp.lt.u32.totalorder %s1739_s25, %s2006_s0 }
  0x19   :  { %p1745_p10 = pnand %p1743_p9, %p1740_p8 }
  0x1b   :  { %1748 = shalt.err (!%p1745_p10)
}
  0x1c   :  { %s1749_s1 = scalar_lea.vmem %s24_s20, 128  ;;  %p1754_p12 = scmp.lt.s32.totalorder %s24_s20, %s24_s20 }
  0x1d   :  { %p1750_p11 = scmp.ne.s32.totalorder %s24_s20, %s1749_s1  ;;  %p1755_p13 = scmp.lt.s32.totalorder %s1749_s1, %s1749_s1 }
  0x1f   :  { %p1756_p0 = por %p1755_p13, %p1754_p12 }
  0x21   :  { %p1757_p1 = pnand %p1756_p0, %p1750_p11 }
  0x23   :  { %1760 = shalt.err (!%p1757_p1)
}
  0x24   :  { %26 = dma.hbm_to_vmem [thread:$0]  %s2006_s0, 128, %s24_s20, [#allocation3]  }
  0x25   :  { %s1761_s12 = scalar_lea.hbm %s2009_s3, 12288 }
  0x26   :  { %p1762_p2 = scmp.ne.s32.totalorder %s2009_s3, %s1761_s12  ;;  %p1765_p3 = scmp.lt.u32.totalorder %s1761_s12, %s2009_s3 }
  0x28   :  { %p1767_p4 = pnand %p1765_p3, %p1762_p2 }
  0x2a   :  { %1770 = shalt.err (!%p1767_p4)
}
  0x2b   :  { %s1771_s17 = scalar_lea.vmem %s47_s22, 12288  ;;  %p1776_p6 = scmp.lt.s32.totalorder %s47_s22, %s47_s22 }
  0x2c   :  { %p1772_p5 = scmp.ne.s32.totalorder %s47_s22, %s1771_s17  ;;  %p1777_p7 = scmp.lt.s32.totalorder %s1771_s17, %s1771_s17 }
  0x2e   :  { %p1778_p8 = por %p1777_p7, %p1776_p6 }
  0x30   :  { %p1779_p9 = pnand %p1778_p8, %p1772_p5 }
  0x32   :  { %1782 = shalt.err (!%p1779_p9)
}
  0x33   :  { %s1840_s0 = smov 192   ;;  %s1841_s18 = smov 12  }
  0x34   :  { %52 = dma.hbm_to_vmem [thread:$0]  %s2009_s3, 12288, %s47_s22, [#allocation6], %s1840_s0, %s1840_s0, %s1841_s18  }
  0x35   :  { %s1842_s21 = smov [#allocation8]   ;;  %s1783_s26 = scalar_lea.hbm %s2011_s5, 6144 }
  0x36   :  { %s60_s23 = sshll.u32 %s1842_s21, 4  ;;  %p1784_p10 = scmp.ne.s32.totalorder %s2011_s5, %s1783_s26  ;;  %s61_s23 = int_to_ptr.vmem [resolvable:$true] %s60_s23 }
  0x37   :  { %p1787_p11 = scmp.lt.u32.totalorder %s1783_s26, %s2011_s5 }
  0x39   :  { %p1789_p12 = pnand %p1787_p11, %p1784_p10 }
  0x3b   :  { %1792 = shalt.err (!%p1789_p12)
}
  0x3c   :  { %s1793_s28 = scalar_lea.vmem %s61_s23, 6144  ;;  %p1798_p0 = scmp.lt.s32.totalorder %s61_s23, %s61_s23 }
  0x3d   :  { %p1794_p13 = scmp.ne.s32.totalorder %s61_s23, %s1793_s28  ;;  %p1799_p1 = scmp.lt.s32.totalorder %s1793_s28, %s1793_s28 }
  0x3f   :  { %p1800_p2 = por %p1799_p1, %p1798_p0 }
  0x41   :  { %p1801_p3 = pnand %p1800_p2, %p1794_p13 }
  0x43   :  { %1804 = shalt.err (!%p1801_p3)
}
  0x44   :  { %s1843_s3 = smov 128   ;;  %s1844_s22 = smov 8  }
  0x45   :  { %66 = dma.hbm_to_vmem [thread:$0]  %s2011_s5, 6144, %s61_s23, [#allocation9], %s1843_s3, %s1843_s3, %s1844_s22  }
  0x46   :  { %1827 = dma.done.wait [#allocation3], 128  }
  0x47   :  { %1828 = vsyncadd [#allocation3], 4294967168 }
  0x48   :  { %1829 = dma.done.wait [#allocation6], 12800  }
  0x49   :  { %1830 = vsyncadd [#allocation6], 4294954496 }
  0x4a   :  { %1831 = dma.done.wait [#allocation9], 6144  }
  0x4b   :  { %1832 = vsyncadd [#allocation9], 4294961152  ;;  %v1845_v0 = vmov 0   ;;  %v1583_v1 = vld [vmem:[#allocation5 + $0x4] ss:$16 sps:$4 sm:$0xff]   ;;  %v84_v3 = vld [vmem:[#allocation2] sm:$0xff]  ;;  %v92_v57 = vlaneseq }
  0x4c   :  { %168 = vmatprep.mubr.bf16.mxu0 %v1845_v0  ;;  %209 = vmatprep.mubr.bf16.mxu1 %v1845_v0  ;;  %v1585_v2 = vld [vmem:[#allocation5] ss:$16 sps:$4 sm:$0xff]   ;;  %v85_v4 = vpack.c.bf16 %v84_v3, %v84_v3  ;;  %v1586_v5 = vld [vmem:[#allocation5 + $0xc] ss:$16 sps:$4 sm:$0xff]   ;;  %vm132_vm0 = vcmask 130048   ;;  %vm1847_vm1 = vmmov 0  }
  0x4d   :  { %136 = vmatprep.subr.bf16.mxu0 %v1583_v1  ;;  %v1588_v6 = vld [vmem:[#allocation5 + $0x8] ss:$16 sps:$4 sm:$0xff]   ;;  %177 = vmatprep.subr.bf16.mxu1 %v1586_v5  ;;  %v1589_v7 = vld [vmem:[#allocation7] ss:$12 sps:$4 sm:$0xff]   ;;  %v1591_v8 = vld [vmem:[#allocation7 + $0x4] ss:$12 sps:$4 sm:$0xff]  }
  0x4e   :  { %137 = vmatpush1.bf16.msra.mxu0 %v1585_v2  ;;  %178 = vmatpush1.bf16.msra.mxu1 %v1588_v6  ;;  %v1594_v9 = vld [vmem:[#allocation7 + $0x1c] ss:$12 sps:$4 sm:$0xff]   ;;  %v1592_v10 = vld [vmem:[#allocation7 + $0x18] ss:$12 sps:$4 sm:$0xff]   ;;  %v1597_v11 = vld [vmem:[#allocation7 + $0x34] ss:$12 sps:$4 sm:$0xff]  }
  0x4f   :  { %883 = vmatprep.subr.bf16.mxu0 %v1591_v8  ;;  %v1595_v12 = vld [vmem:[#allocation7 + $0x30] ss:$12 sps:$4 sm:$0xff]   ;;  %v1600_v13 = vld [vmem:[#allocation7 + $0x4c] ss:$12 sps:$4 sm:$0xff]   ;;  %v1598_v14 = vld [vmem:[#allocation7 + $0x48] ss:$12 sps:$4 sm:$0xff]  }
  0x50   :  { %v1603_v15 = vld [vmem:[#allocation7 + $0x64] ss:$12 sps:$4 sm:$0xff]   ;;  %v1616_v16 = vld [vmem:[#allocation7 + $0xc8] ss:$12 sps:$4 sm:$0xff]   ;;  %v1601_v18 = vld [vmem:[#allocation7 + $0x60] ss:$12 sps:$4 sm:$0xff]  }
  0x51   :  { %1276 = vmatmul.mubr.msk.bf16.vlgmr.msra.gmra.mrb[0].mxu0 %vm132_vm0, %v85_v4  ;;  %1277 = vmatmul.mubr.msk.bf16.vlgmr.msra.gmra.mrb[0].mxu1 %vm132_vm0, %v85_v4  ;;  %v1617_v17 = vld [vmem:[#allocation7 + $0x8] ss:$12 sps:$4 sm:$0xff]   ;;  %v1621_v20 = vld [vmem:[#allocation7 + $0xe0] ss:$12 sps:$4 sm:$0xff]   ;;  %v1604_v22 = vld [vmem:[#allocation7 + $0x78] ss:$12 sps:$4 sm:$0xff]  }
  0x52   :  { %884 = vmatpush1.bf16.msra.mxu0 %v1589_v7  ;;  %v1606_v19 = vld [vmem:[#allocation7 + $0x7c] ss:$12 sps:$4 sm:$0xff]   ;;  %1375 = vmatprep.subr.bf16.mxu1 %v1616_v16  ;;  %v1622_v21 = vld [vmem:[#allocation7 + $0x20] ss:$12 sps:$4 sm:$0xff]   ;;  %v1626_v23 = vld [vmem:[#allocation7 + $0xf8] ss:$12 sps:$4 sm:$0xff]  }
  0x53   :  { %885 = vmatprep.subr.bf16.mxu0 %v1594_v9  ;;  %1376 = vmatpush3.bf16.msra.mxu1 %v1617_v17  ;;  %v1627_v24 = vld [vmem:[#allocation7 + $0x38] ss:$12 sps:$4 sm:$0xff]   ;;  %v1609_v25 = vld [vmem:[#allocation7 + $0x94] ss:$12 sps:$4 sm:$0xff]   ;;  %v1607_v26 = vld [vmem:[#allocation7 + $0x90] ss:$12 sps:$4 sm:$0xff]  }
  0x54   :  { %1377 = vmatprep.subr.bf16.mxu1 %v1621_v20  ;;  %v1631_v27 = vld [vmem:[#allocation7 + $0x110] ss:$12 sps:$4 sm:$0xff]   ;;  %v1612_v29 = vld [vmem:[#allocation7 + $0xac] ss:$12 sps:$4 sm:$0xff]   ;;  %v1636_v30 = vld [vmem:[#allocation7 + $0x128] ss:$12 sps:$4 sm:$0xff]  }
  0x55   :  { %v1632_v28 = vld [vmem:[#allocation7 + $0x50] ss:$12 sps:$4 sm:$0xff]   ;;  %v1610_v31 = vld [vmem:[#allocation7 + $0xa8] ss:$12 sps:$4 sm:$0xff]   ;;  %v1641_v34 = vld [vmem:[#allocation7 + $0x140] ss:$12 sps:$4 sm:$0xff]  }
  0x56   :  { %886 = vmatpush1.bf16.msra.mxu0 %v1592_v10  ;;  %v1615_v32 = vld [vmem:[#allocation7 + $0xc4] ss:$12 sps:$4 sm:$0xff]   ;;  %v1637_v33 = vld [vmem:[#allocation7 + $0x68] ss:$12 sps:$4 sm:$0xff]   ;;  %v1613_v35 = vld [vmem:[#allocation7 + $0xc0] ss:$12 sps:$4 sm:$0xff]  }
  0x57   :  { %887 = vmatprep.subr.bf16.mxu0 %v1597_v11  ;;  %1378 = vmatpush3.bf16.msra.mxu1 %v1622_v21  ;;  %v1620_v36 = vld [vmem:[#allocation7 + $0xdc] ss:$12 sps:$4 sm:$0xff]   ;;  %v1642_v37 = vld [vmem:[#allocation7 + $0x80] ss:$12 sps:$4 sm:$0xff]   ;;  %v1618_v38 = vld [vmem:[#allocation7 + $0xd8] ss:$12 sps:$4 sm:$0xff]  }
  0x58   :  { %1379 = vmatprep.subr.bf16.mxu1 %v1626_v23  ;;  %v1625_v39 = vld [vmem:[#allocation7 + $0xf4] ss:$12 sps:$4 sm:$0xff]   ;;  %v1623_v40 = vld [vmem:[#allocation7 + $0xf0] ss:$12 sps:$4 sm:$0xff]   ;;  %v1630_v41 = vld [vmem:[#allocation7 + $0x10c] ss:$12 sps:$4 sm:$0xff]  }
  0x59   :  { %v1628_v42 = vld [vmem:[#allocation7 + $0x108] ss:$12 sps:$4 sm:$0xff]   ;;  %v1635_v43 = vld [vmem:[#allocation7 + $0x124] ss:$12 sps:$4 sm:$0xff]   ;;  %v1633_v44 = vld [vmem:[#allocation7 + $0x120] ss:$12 sps:$4 sm:$0xff]  }
  0x5a   :  { %888 = vmatpush1.bf16.msra.mxu0 %v1595_v12  ;;  %v1640_v45 = vld [vmem:[#allocation7 + $0x13c] ss:$12 sps:$4 sm:$0xff]   ;;  %v1638_v46 = vld [vmem:[#allocation7 + $0x138] ss:$12 sps:$4 sm:$0xff]   ;;  %v1645_v47 = vld [vmem:[#allocation7 + $0x154] ss:$12 sps:$4 sm:$0xff]  }
  0x5b   :  { %889 = vmatprep.subr.bf16.mxu0 %v1600_v13  ;;  %1380 = vmatpush3.bf16.msra.mxu1 %v1627_v24  ;;  %v1646_v48 = vld [vmem:[#allocation7 + $0x158] ss:$12 sps:$4 sm:$0xff]   ;;  %v1643_v49 = vld [vmem:[#allocation7 + $0x150] ss:$12 sps:$4 sm:$0xff]   ;;  %v1648_v53 = vld [vmem:[#allocation7 + $0x168] ss:$12 sps:$4 sm:$0xff]  }
  0x5c   :  { %1381 = vmatprep.subr.bf16.mxu1 %v1631_v27  ;;  %v1647_v50 = vld [vmem:[#allocation7 + $0x98] ss:$12 sps:$4 sm:$0xff]   ;;  %v1651_v52 = vld [vmem:[#allocation7 + $0x170] ss:$12 sps:$4 sm:$0xff]   ;;  %v1656_v56 = vld [vmem:[#allocation7 + $0x248] ss:$12 sps:$4 sm:$0xff]  }
  0x5d   :  { %v1650_v51 = vld [vmem:[#allocation7 + $0x16c] ss:$12 sps:$4 sm:$0xff]   ;;  %v1652_v54 = vld [vmem:[#allocation7 + $0xb0] ss:$12 sps:$4 sm:$0xff]   ;;  %v1945_v58 = vshrl.u32 %v92_v57, 7  ;;  %s1849_s16 = smov [#allocation10]  }
  0x5e   :  { %890 = vmatpush1.bf16.msra.mxu0 %v1598_v14  ;;  %v1655_v55 = vld [vmem:[#allocation7 + $0x184] ss:$12 sps:$4 sm:$0xff]   ;;  %v1953_v60 = vld [vmem:[%s2008_s2] sm:$0xf]  ;;  %v1653_v17 = vld [vmem:[#allocation7 + $0x180] ss:$12 sps:$4 sm:$0xff]  }
  0x5f   :  { %891 = vmatprep.subr.bf16.mxu0 %v1603_v15  ;;  %1382 = vmatpush3.bf16.msra.mxu1 %v1632_v28  ;;  %v1948_v59 = vsub.s32 0, %v1945_v58  ;;  %v98_v61 = vsub.s32 1, %v1945_v58  ;;  %v106_v62 = vsub.s32 3, %v1945_v58  ;;  %v1660_v21 = vld [vmem:[#allocation7 + $0x19c] ss:$12 sps:$4 sm:$0xff]   ;;  %s1261_s17 = sshll.u32 %s1849_s16, 4  ;;  %s1262_s17 = int_to_ptr.vmem [resolvable:$true] %s1261_s17 }
  0x60   :  { %1383 = vmatprep.subr.bf16.mxu1 %v1636_v30  ;;  %v1658_v24 = vld [vmem:[#allocation7 + $0x198] ss:$12 sps:$4 sm:$0xff]   ;;  %v1663_v28 = vld [vmem:[#allocation7 + $0x1b0] ss:$12 sps:$4 sm:$0xff]   ;;  %p1810_p5 = scmp.lt.s32.totalorder %s1262_s17, %s1262_s17 }
  0x61   :  { %v95_v63 = vrot.slane %v1953_v60, %v1948_v59  ;;  %v99_v1 = vrot.slane %v1953_v60, %v98_v61  ;;  %v107_v3 = vrot.slane %v1953_v60, %v106_v62  ;;  %v1666_v27 = vld [vmem:[#allocation7 + $0x278] ss:$12 sps:$4 sm:$0xff]   ;;  %v1698_v57 = vld [vmem:[#allocation7 + $0x25c] ss:$12 sps:$4 sm:$0xff]   ;;  %v1701_v62 = vld [vmem:[#allocation7 + $0x274] ss:$12 sps:$4 sm:$0xff]  }
  0x62   :  { %892 = vmatpush1.bf16.msra.mxu0 %v1601_v18  ;;  %v1657_v18 = vld [vmem:[#allocation7 + $0x188] ss:$12 sps:$4 sm:$0xff]   ;;  %v1670_v30 = vld [vmem:[#allocation7 + $0x1cc] ss:$12 sps:$4 sm:$0xff]  }
  0x63   :  { %893 = vmatprep.subr.bf16.mxu0 %v1606_v19  ;;  %1384 = vmatpush3.bf16.msra.mxu1 %v1637_v33  ;;  %v1672_v33 = vld [vmem:[#allocation7 + $0x1d0] ss:$12 sps:$4 sm:$0xff]  }
  0x64   :  { %1385 = vmatprep.subr.bf16.mxu1 %v1641_v34  ;;  %v1675_v34 = vld [vmem:[#allocation7 + $0x1e4] ss:$12 sps:$4 sm:$0xff]  }
  0x66   :  { %894 = vmatpush1.bf16.msra.mxu0 %v1604_v22  ;;  %v1661_v22 = vld [vmem:[#allocation7 + $0x260] ss:$12 sps:$4 sm:$0xff]  }
  0x67   :  { %895 = vmatprep.subr.bf16.mxu0 %v1609_v25  ;;  %1386 = vmatpush3.bf16.msra.mxu1 %v1642_v37  ;;  %v1662_v25 = vld [vmem:[#allocation7 + $0x1a0] ss:$12 sps:$4 sm:$0xff]  }
  0x68   :  { %1387 = vmatprep.subr.bf16.mxu1 %v1646_v48  ;;  %v1673_v37 = vld [vmem:[#allocation7 + $0x1e0] ss:$12 sps:$4 sm:$0xff]   ;;  %v1687_v48 = vld [vmem:[#allocation7 + $0x218] ss:$12 sps:$4 sm:$0xff]  }
  0x6a   :  { %896 = vmatpush1.bf16.msra.mxu0 %v1607_v26  ;;  %v1665_v26 = vld [vmem:[#allocation7 + $0x1b4] ss:$12 sps:$4 sm:$0xff]  }
  0x6b   :  { %897 = vmatprep.subr.bf16.mxu0 %v1612_v29  ;;  %1388 = vmatpush3.bf16.msra.mxu1 %v1647_v50  ;;  %v1667_v29 = vld [vmem:[#allocation7 + $0x1b8] ss:$12 sps:$4 sm:$0xff]   ;;  %v1691_v50 = vld [vmem:[#allocation7 + $0x2f0] ss:$12 sps:$4 sm:$0xff]  }
  0x6c   :  { %1389 = vmatprep.subr.bf16.mxu1 %v1651_v52  ;;  %v1688_v52 = vld [vmem:[#allocation7 + $0x228] ss:$12 sps:$4 sm:$0xff]  }
  0x6e   :  { %898 = vmatpush1.bf16.msra.mxu0 %v1610_v31  ;;  %v1671_v31 = vld [vmem:[#allocation7 + $0x290] ss:$12 sps:$4 sm:$0xff]  }
  0x6f   :  { %899 = vmatprep.subr.bf16.mxu0 %v1615_v32  ;;  %1390 = vmatpush3.bf16.msra.mxu1 %v1652_v54  ;;  %v1668_v32 = vld [vmem:[#allocation7 + $0x1c8] ss:$12 sps:$4 sm:$0xff]   ;;  %v1695_v54 = vld [vmem:[#allocation7 + $0x244] ss:$12 sps:$4 sm:$0xff]  }
  0x70   :  { %1397 = vmatprep.subr.bf16.mxu1 %v1656_v56  ;;  %v1693_v56 = vld [vmem:[#allocation7 + $0x240] ss:$12 sps:$4 sm:$0xff]  }
  0x72   :  { %900 = vmatpush1.bf16.msra.mxu0 %v1613_v35  ;;  %v1676_v35 = vld [vmem:[#allocation7 + $0x2a8] ss:$12 sps:$4 sm:$0xff]  }
  0x73   :  { %901 = vmatprep.subr.bf16.mxu0 %v1620_v36  ;;  %v102_v36 = vsub.s32 2, %v1945_v58  ;;  %v1848_v58 = vmov 0.0  }
  0x76   :  { %902 = vmatpush1.bf16.msra.mxu0 %v1618_v38  ;;  %v1677_v38 = vld [vmem:[#allocation7 + $0x1e8] ss:$12 sps:$4 sm:$0xff]  }
  0x77   :  { %903 = vmatprep.subr.bf16.mxu0 %v1625_v39  ;;  %v1680_v39 = vld [vmem:[#allocation7 + $0x1fc] ss:$12 sps:$4 sm:$0xff]  }
  0x7a   :  { %904 = vmatpush1.bf16.msra.mxu0 %v1623_v40  ;;  %v1681_v40 = vld [vmem:[#allocation7 + $0x2c0] ss:$12 sps:$4 sm:$0xff]  }
  0x7b   :  { %905 = vmatprep.subr.bf16.mxu0 %v1630_v41  ;;  %v103_v41 = vrot.slane %v1953_v60, %v102_v36  ;;  %v1696_v60 = vld [vmem:[#allocation7 + $0x258] ss:$12 sps:$4 sm:$0xff]  }
  0x7e   :  { %906 = vmatpush1.bf16.msra.mxu0 %v1628_v42  ;;  %v1678_v42 = vld [vmem:[#allocation7 + $0x1f8] ss:$12 sps:$4 sm:$0xff]  }
  0x7f   :  { %907 = vmatprep.subr.bf16.mxu0 %v1635_v43  ;;  %v1682_v43 = vld [vmem:[#allocation7 + $0x200] ss:$12 sps:$4 sm:$0xff]  }
  0x82   :  { %908 = vmatpush1.bf16.msra.mxu0 %v1633_v44  ;;  %v1685_v44 = vld [vmem:[#allocation7 + $0x214] ss:$12 sps:$4 sm:$0xff]  }
  0x83   :  { %909 = vmatprep.subr.bf16.mxu0 %v1640_v45  ;;  %v1686_v45 = vld [vmem:[#allocation7 + $0x2d8] ss:$12 sps:$4 sm:$0xff]  }
  0x86   :  { %910 = vmatpush1.bf16.msra.mxu0 %v1638_v46 }
  0x87   :  { %911 = vmatprep.subr.bf16.mxu0 %v1645_v47  ;;  %v1683_v47 = vld [vmem:[#allocation7 + $0x210] ss:$12 sps:$4 sm:$0xff]  }
  0x8a   :  { %912 = vmatpush1.bf16.msra.mxu0 %v1643_v49  ;;  %v1690_v49 = vld [vmem:[#allocation7 + $0x22c] ss:$12 sps:$4 sm:$0xff]  }
  0x8b   :  { %913 = vmatprep.subr.bf16.mxu0 %v1650_v51 }
  0x8e   :  { %914 = vmatpush1.bf16.msra.mxu0 %v1648_v53  ;;  %v1692_v53 = vld [vmem:[#allocation7 + $0x230] ss:$12 sps:$4 sm:$0xff]  }
  0x8f   :  { %924 = vmatprep.subr.bf16.mxu0 %v1655_v55 }
 0x124   :  { %v170_v2 = vpop.f32.mrb[0].mxu0  ;;  %v1963_v8 = vpop.f32.mrb[0].mxu1 }
 0x125   :  { %v171_v4 = vadd.f32 %v170_v2, %v95_v63  ;;  %v172_v5 = vpop.f32.mrb[1].mxu0  ;;  %v213_v11 = vpop.f32.mrb[1].mxu1  ;;  %v212_v46 = vadd.f32 %v1963_v8, %v103_v41  ;;  %v1699_v63 = vld [vmem:[#allocation7 + $0x270] ss:$12 sps:$4 sm:$0xff]   ;;  %v1702_v2 = vld [vmem:[#allocation7 + $0x288] ss:$12 sps:$4 sm:$0xff]  }
 0x126   :  { %v173_v6 = vadd.f32 %v172_v5, %v99_v1  ;;  %v174_v7 = vpop.f32.mrb[2].mxu0  ;;  %v214_v13 = vadd.f32 %v213_v11, %v107_v3  ;;  %v215_v14 = vpop.f32.mrb[2].mxu1  ;;  %v1704_v1 = vld [vmem:[#allocation7 + $0x28c] ss:$12 sps:$4 sm:$0xff]   ;;  %v1707_v3 = vld [vmem:[#allocation7 + $0x2a4] ss:$12 sps:$4 sm:$0xff]  }
 0x127   :  { %v218_v9 = vmax.f32 %v171_v4, 0.0  ;;  %v175_v10 = vpop.f32.mrb[3].mxu0  ;;  %v216_v15 = vpop.f32.mrb[3].mxu1  ;;  %v220_v51 = vmax.f32 %v212_v46, 0.0  ;;  %v1705_v4 = vld [vmem:[#allocation7 + $0x2a0] ss:$12 sps:$4 sm:$0xff]  }
 0x128   :  { %v219_v12 = vmax.f32 %v173_v6, 0.0  ;;  %v221_v19 = vmax.f32 %v214_v13, 0.0  ;;  %v1710_v5 = vld [vmem:[#allocation7 + $0x2bc] ss:$12 sps:$4 sm:$0xff]   ;;  %v1708_v6 = vld [vmem:[#allocation7 + $0x2b8] ss:$12 sps:$4 sm:$0xff]  }
 0x129   :  { %v222_v20 = vpack.c.bf16 %v218_v9, %v218_v9  ;;  %v224_v55 = vpack.c.bf16 %v220_v51, %v220_v51  ;;  %v1713_v7 = vld [vmem:[#allocation7 + $0x2d4] ss:$12 sps:$4 sm:$0xff]   ;;  %v1711_v8 = vld [vmem:[#allocation7 + $0x2d0] ss:$12 sps:$4 sm:$0xff]   ;;  %v1716_v9 = vld [vmem:[#allocation7 + $0x2ec] ss:$12 sps:$4 sm:$0xff]  }
 0x12a   :  { %v223_v16 = vpack.c.bf16 %v219_v12, %v219_v12  ;;  %v225_v23 = vpack.c.bf16 %v221_v19, %v221_v19  ;;  %v1714_v10 = vld [vmem:[#allocation7 + $0x2e8] ss:$12 sps:$4 sm:$0xff]   ;;  %v1064_v11 = vld [vmem:[#allocation8 + $0x80] sm:$0xff]  ;;  %v1059_v46 = vld [vmem:[#allocation8 + $0x58] sm:$0xff] }
 0x12b   :  { %v1065_v12 = vld [vmem:[#allocation8 + $0x88] sm:$0xff]  ;;  %v1048_v14 = vld [vmem:[#allocation8] sm:$0xff]  ;;  %v1050_v19 = vld [vmem:[#allocation8 + $0x10] sm:$0xff] }
 0x12c   :  { %915 = vmatprep.mubr.bf16.mxu0 %v223_v16  ;;  %997 = vmatprep.mubr.bf16.mxu1 %v223_v16  ;;  %v1506_v13 = vpack.c.bf16 %v1065_v12, %v1064_v11  ;;  %v1049_v15 = vld [vmem:[#allocation8 + $0x8] sm:$0xff]  ;;  %v1074_v41 = vld [vmem:[#allocation8 + $0xd0] sm:$0xff]  ;;  %v1060_v51 = vld [vmem:[#allocation8 + $0x60] sm:$0xff] }
 0x12d   :  { %916 = vmatmul.mubr.bf16.vlgmr.msra.gmra.mrb[4].mxu0 %v222_v20  ;;  %998 = vmatmul.mubr.bf16.vlgmr.msra.gmra.mrb[4].mxu1 %v222_v20  ;;  %v1508_v16 = vpack.c.bf16 %v1049_v15, %v1048_v14 }
 0x12e   :  { %925 = vmatpush1.bf16.msra.mxu0 %v1653_v17  ;;  %1398 = vmatpush3.bf16.msra.mxu1 %v1657_v18  ;;  %v1066_v17 = vld [vmem:[#allocation8 + $0x90] sm:$0xff]  ;;  %v1067_v18 = vld [vmem:[#allocation8 + $0x98] sm:$0xff] }
 0x12f   :  { %926 = vmatprep.subr.bf16.mxu0 %v1660_v21  ;;  %1399 = vmatprep.subr.bf16.mxu1 %v1661_v22  ;;  %v1510_v20 = vpack.c.bf16 %v1067_v18, %v1066_v17  ;;  %v1051_v21 = vld [vmem:[#allocation8 + $0x18] sm:$0xff]  ;;  %v1068_v22 = vld [vmem:[#allocation8 + $0xa0] sm:$0xff] }
 0x130   :  { %1037 = vmatprep.mubr.bf16.mxu1 %v225_v23  ;;  %956 = vmatprep.mubr.bf16.mxu0 %v225_v23  ;;  %v1069_v23 = vld [vmem:[#allocation8 + $0xa8] sm:$0xff] }
 0x132   :  { %927 = vmatpush1.bf16.msra.mxu0 %v1658_v24  ;;  %1400 = vmatpush3.bf16.msra.mxu1 %v1662_v25  ;;  %v1512_v24 = vpack.c.bf16 %v1051_v21, %v1050_v19  ;;  %v1514_v25 = vpack.c.bf16 %v1069_v23, %v1068_v22  ;;  %v1081_v21 = vld [vmem:[#allocation8 + $0x108] sm:$0xff] }
 0x133   :  { %928 = vmatprep.subr.bf16.mxu0 %v1665_v26  ;;  %1401 = vmatprep.subr.bf16.mxu1 %v1666_v27  ;;  %v1052_v26 = vld [vmem:[#allocation8 + $0x20] sm:$0xff]  ;;  %v1053_v27 = vld [vmem:[#allocation8 + $0x28] sm:$0xff] }
 0x136   :  { %929 = vmatpush1.bf16.msra.mxu0 %v1663_v28  ;;  %1402 = vmatpush3.bf16.msra.mxu1 %v1667_v29  ;;  %v1070_v28 = vld [vmem:[#allocation8 + $0xb0] sm:$0xff]  ;;  %v1071_v29 = vld [vmem:[#allocation8 + $0xb8] sm:$0xff] }
 0x137   :  { %930 = vmatprep.subr.bf16.mxu0 %v1670_v30  ;;  %1403 = vmatprep.subr.bf16.mxu1 %v1671_v31  ;;  %v1516_v30 = vpack.c.bf16 %v1053_v27, %v1052_v26  ;;  %v1518_v31 = vpack.c.bf16 %v1071_v29, %v1070_v28  ;;  %v1082_v27 = vld [vmem:[#allocation8 + $0x110] sm:$0xff]  ;;  %v1083_v28 = vld [vmem:[#allocation8 + $0x118] sm:$0xff] }
 0x138   :  { %v1542_v29 = vpack.c.bf16 %v1083_v28, %v1082_v27 }
 0x13a   :  { %931 = vmatpush1.bf16.msra.mxu0 %v1668_v32  ;;  %1404 = vmatpush3.bf16.msra.mxu1 %v1672_v33  ;;  %v1054_v32 = vld [vmem:[#allocation8 + $0x30] sm:$0xff]  ;;  %v1055_v33 = vld [vmem:[#allocation8 + $0x38] sm:$0xff] }
 0x13b   :  { %932 = vmatprep.subr.bf16.mxu0 %v1675_v34  ;;  %1405 = vmatprep.subr.bf16.mxu1 %v1676_v35  ;;  %v1072_v34 = vld [vmem:[#allocation8 + $0xc0] sm:$0xff]  ;;  %v1073_v35 = vld [vmem:[#allocation8 + $0xc8] sm:$0xff] }
 0x13e   :  { %933 = vmatpush1.bf16.msra.mxu0 %v1673_v37  ;;  %1406 = vmatpush3.bf16.msra.mxu1 %v1677_v38  ;;  %v1520_v37 = vpack.c.bf16 %v1055_v33, %v1054_v32  ;;  %v1522_v38 = vpack.c.bf16 %v1073_v35, %v1072_v34  ;;  %v1086_v32 = vld [vmem:[#allocation8 + $0x130] sm:$0xff]  ;;  %v1087_v33 = vld [vmem:[#allocation8 + $0x138] sm:$0xff]  ;;  %v1088_v35 = vld [vmem:[#allocation8 + $0x140] sm:$0xff] }
 0x13f   :  { %934 = vmatprep.subr.bf16.mxu0 %v1680_v39  ;;  %1407 = vmatprep.subr.bf16.mxu1 %v1681_v40  ;;  %v1056_v39 = vld [vmem:[#allocation8 + $0x40] sm:$0xff]  ;;  %v1057_v40 = vld [vmem:[#allocation8 + $0x48] sm:$0xff]  ;;  %v1548_v34 = vpack.c.bf16 %v1087_v33, %v1086_v32 }
 0x142   :  { %935 = vmatpush1.bf16.msra.mxu0 %v1678_v42  ;;  %1408 = vmatpush3.bf16.msra.mxu1 %v1682_v43  ;;  %v1075_v42 = vld [vmem:[#allocation8 + $0xd8] sm:$0xff]  ;;  %v1524_v43 = vpack.c.bf16 %v1057_v40, %v1056_v39  ;;  %v1090_v39 = vld [vmem:[#allocation8 + $0x150] sm:$0xff] }
 0x143   :  { %936 = vmatprep.subr.bf16.mxu0 %v1685_v44  ;;  %1409 = vmatprep.subr.bf16.mxu1 %v1686_v45  ;;  %v1526_v44 = vpack.c.bf16 %v1075_v42, %v1074_v41  ;;  %v1058_v45 = vld [vmem:[#allocation8 + $0x50] sm:$0xff]  ;;  %v1091_v40 = vld [vmem:[#allocation8 + $0x158] sm:$0xff]  ;;  %v1092_v42 = vld [vmem:[#allocation8 + $0x160] sm:$0xff] }
 0x144   :  { %v1554_v41 = vpack.c.bf16 %v1091_v40, %v1090_v39 }
 0x146   :  { %937 = vmatpush1.bf16.msra.mxu0 %v1683_v47  ;;  %1410 = vmatpush3.bf16.msra.mxu1 %v1687_v48  ;;  %v1076_v47 = vld [vmem:[#allocation8 + $0xe0] sm:$0xff]  ;;  %v1077_v48 = vld [vmem:[#allocation8 + $0xe8] sm:$0xff] }
 0x147   :  { %938 = vmatprep.subr.bf16.mxu0 %v1690_v49  ;;  %1411 = vmatprep.subr.bf16.mxu1 %v1691_v50  ;;  %v1528_v49 = vpack.c.bf16 %v1059_v46, %v1058_v45  ;;  %v1530_v50 = vpack.c.bf16 %v1077_v48, %v1076_v47  ;;  %v1094_v45 = vld [vmem:[#allocation8 + $0x170] sm:$0xff]  ;;  %v1095_v46 = vld [vmem:[#allocation8 + $0x178] sm:$0xff] }
 0x148   :  { %v1560_v47 = vpack.c.bf16 %v1095_v46, %v1094_v45 }
 0x14a   :  { %939 = vmatpush1.bf16.msra.mxu0 %v1688_v52  ;;  %1412 = vmatpush3.bf16.msra.mxu1 %v1692_v53  ;;  %v1061_v52 = vld [vmem:[#allocation8 + $0x68] sm:$0xff] }
 0x14b   :  { %940 = vmatprep.subr.bf16.mxu0 %v1695_v54  ;;  %1507 = vmatprep.subr.bf16.mxu1 %v1506_v13  ;;  %v1532_v53 = vpack.c.bf16 %v1061_v52, %v1060_v51  ;;  %v1078_v54 = vld [vmem:[#allocation8 + $0xf0] sm:$0xff]  ;;  %v1243_v52 = vld [vmem:[%s2013_s7] sm:$0x1]  ;;  %s1805_s7 = scalar_lea.vmem %s1262_s17, 128 }
 0x14c   :  { %vm1244_vm2 = vcmp.ne.f32.partialorder %v1243_v52, 0.0  ;;  %p1806_p4 = scmp.ne.s32.totalorder %s1262_s17, %s1805_s7  ;;  %p1811_p6 = scmp.lt.s32.totalorder %s1805_s7, %s1805_s7 }
 0x14d   :  { %1038 = vmatmul.mubr.bf16.vlgmr.msra.gmra.mrb[8].mxu1 %v224_v55 }
 0x14e   :  { %941 = vmatpush1.bf16.msra.mxu0 %v1693_v56  ;;  %1509 = vmatpush3.bf16.msra.mxu1 %v1508_v16  ;;  %p1812_p7 = por %p1811_p6, %p1810_p5 }
 0x14f   :  { %942 = vmatprep.subr.bf16.mxu0 %v1698_v57  ;;  %1511 = vmatprep.subr.bf16.mxu1 %v1510_v20  ;;  %v1062_v57 = vld [vmem:[#allocation8 + $0x70] sm:$0xff]  ;;  %v1080_v20 = vld [vmem:[#allocation8 + $0x100] sm:$0xff] }
 0x150   :  { %p1813_p8 = pnand %p1812_p7, %p1806_p4 }
 0x152   :  { %943 = vmatpush1.bf16.msra.mxu0 %v1696_v60  ;;  %1513 = vmatpush3.bf16.msra.mxu1 %v1512_v24  ;;  %v1063_v60 = vld [vmem:[#allocation8 + $0x78] sm:$0xff] }
 0x153   :  { %944 = vmatprep.subr.bf16.mxu0 %v1701_v62  ;;  %1515 = vmatprep.subr.bf16.mxu1 %v1514_v25  ;;  %v1536_v62 = vpack.c.bf16 %v1063_v60, %v1062_v57  ;;  %v1539_v25 = vpack.c.bf16 %v1081_v21, %v1080_v20 }
 0x156   :  { %945 = vmatpush1.bf16.msra.mxu0 %v1699_v63  ;;  %1517 = vmatpush3.bf16.msra.mxu1 %v1516_v30  ;;  %v1846_v63 = vmov 0.0|0.0   ;;  %v1085_v30 = vld [vmem:[#allocation8 + $0x128] sm:$0xff] }
 0x157   :  { %946 = vmatprep.subr.bf16.mxu0 %v1704_v1  ;;  %1519 = vmatprep.subr.bf16.mxu1 %v1518_v31 }
 0x15a   :  { %947 = vmatpush1.bf16.msra.mxu0 %v1702_v2  ;;  %1521 = vmatpush3.bf16.msra.mxu1 %v1520_v37  ;;  %v1089_v37 = vld [vmem:[#allocation8 + $0x148] sm:$0xff] }
 0x15b   :  { %948 = vmatprep.subr.bf16.mxu0 %v1707_v3  ;;  %1523 = vmatprep.subr.bf16.mxu1 %v1522_v38  ;;  %v1551_v38 = vpack.c.bf16 %v1089_v37, %v1088_v35 }
 0x15e   :  { %949 = vmatpush1.bf16.msra.mxu0 %v1705_v4  ;;  %1525 = vmatpush3.bf16.msra.mxu1 %v1524_v43  ;;  %v1093_v43 = vld [vmem:[#allocation8 + $0x168] sm:$0xff] }
 0x15f   :  { %950 = vmatprep.subr.bf16.mxu0 %v1710_v5  ;;  %1527 = vmatprep.subr.bf16.mxu1 %v1526_v44  ;;  %v1557_v44 = vpack.c.bf16 %v1093_v43, %v1092_v42 }
 0x162   :  { %951 = vmatpush1.bf16.msra.mxu0 %v1708_v6  ;;  %1529 = vmatpush3.bf16.msra.mxu1 %v1528_v49  ;;  %v354_v6 = vld [vmem:[%s2010_s4] sm:$0x7] }
 0x163   :  { %952 = vmatprep.subr.bf16.mxu0 %v1713_v7  ;;  %1531 = vmatprep.subr.bf16.mxu1 %v1530_v50  ;;  %v367_v7 = vrot.slane %v354_v6, %v102_v36  ;;  %v359_v15 = vrot.slane %v354_v6, %v1948_v59  ;;  %v363_v16 = vrot.slane %v354_v6, %v98_v61  ;;  %v1084_v61 = vld [vmem:[#allocation8 + $0x120] sm:$0xff] }
 0x164   :  { %v1545_v31 = vpack.c.bf16 %v1085_v30, %v1084_v61 }
 0x166   :  { %953 = vmatpush1.bf16.msra.mxu0 %v1711_v8  ;;  %1533 = vmatpush3.bf16.msra.mxu1 %v1532_v53  ;;  %v1374_v53 = vld [vmem:[%s2012_s6] ss:$0 sm:$0xff] }
 0x167   :  { %954 = vmatprep.subr.bf16.mxu0 %v1716_v9 }
 0x16a   :  { %955 = vmatpush1.bf16.msra.mxu0 %v1714_v10 }
 0x16d   :  { %957 = vmatmul.mubr.bf16.vlgmr.msra.gmra.mrb[4].mxu0 %v224_v55  ;;  %v1079_v55 = vld [vmem:[#allocation8 + $0xf8] sm:$0xff] }
 0x16e   :  { %v1534_v56 = vpack.c.bf16 %v1079_v55, %v1078_v54  ;;  %v1247_v54 = vsel %vm1244_vm2, 1, %v1845_v0 }
 0x170   :  { %1535 = vmatprep.subr.bf16.mxu1 %v1534_v56  ;;  %v1251_v56 = vrot.slane %v1247_v54, %v1948_v59 }
 0x171   :  { %1537 = vmatpush3.bf16.msra.mxu1 %v1536_v62 }
 0x172   :  { %1538 = vmatprep.subr.bf16.mxu1 %v1846_v63  ;;  %vm1252_vm3 = vcmp.eq.s32.totalorder %v1251_v56, 1 }
 0x200   :  { %v1391_v1 = vpop.f32.mrb[4].mxu1 }
 0x201   :  { %v1392_v2 = vpop.f32.mrb[5].mxu1 }
 0x202   :  { %v1393_v3 = vadd.f32 %v1392_v2, %v1391_v1  ;;  %v1394_v4 = vpop.f32.mrb[6].mxu1 }
 0x203   :  { %v1395_v5 = vpop.f32.mrb[7].mxu1 }
 0x204   :  { %v1000_v10 = vadd.f32 %v1393_v3, %v367_v7 }
 0x220   :  { %v1413_v8 = vpop.f32.mrb[8].mxu1 }
 0x221   :  { %v1414_v9 = vpop.f32.mrb[9].mxu1 }
 0x222   :  { %v1415_v11 = vadd.f32 %v1414_v9, %v1413_v8  ;;  %v1416_v12 = vpop.f32.mrb[10].mxu1 }
 0x223   :  { %v1417_v13 = vpop.f32.mrb[11].mxu1 }
 0x224   :  { %v1040_v14 = vadd.f32 %v1415_v11, %v1000_v10 }
 0x226   :  { %v1047_v48 = vmax.f32 %v1040_v14, 0.0 }
 0x240   :  { %v958_v17 = vpop.f32.mrb[4].mxu0 }
 0x241   :  { %v1562_v18 = vadd.f32 %v958_v17, %v359_v15  ;;  %v960_v19 = vpop.f32.mrb[5].mxu0 }
 0x242   :  { %v1563_v22 = vadd.f32 %v960_v19, %v363_v16  ;;  %v962_v23 = vpop.f32.mrb[6].mxu0 }
 0x243   :  { %v963_v36 = vpop.f32.mrb[7].mxu0  ;;  %v1045_v26 = vmax.f32 %v1562_v18, 0.0 }
 0x244   :  { %v1046_v24 = vmax.f32 %v1563_v22, 0.0 }
 0x246   :  { %1167 = vmatprep.mubr.f32.mxu1 %v1046_v24 }
 0x247   :  { %1168 = vmatmul.mubr.f32.vlgmr.msra.gmra.mrb[12].mxu1 %v1045_v26 }
 0x248   :  { %1540 = vmatpush3.bf16.msra.mxu1 %v1539_v25  ;;  %1503 = vmatprep.mubr.msk.f32.mxu1 %vm1847_vm1, %v1848_v58 }
 0x249   :  { %1541 = vmatprep.subr.bf16.mxu1 %v1846_v63 }
 0x24c   :  { %1543 = vmatpush3.bf16.msra.mxu1 %v1542_v29 }
 0x24d   :  { %1544 = vmatprep.subr.bf16.mxu1 %v1846_v63 }
 0x250   :  { %1546 = vmatpush3.bf16.msra.mxu1 %v1545_v31 }
 0x251   :  { %1547 = vmatprep.subr.bf16.mxu1 %v1846_v63 }
 0x254   :  { %1549 = vmatpush3.bf16.msra.mxu1 %v1548_v34 }
 0x255   :  { %1550 = vmatprep.subr.bf16.mxu1 %v1846_v63 }
 0x258   :  { %1552 = vmatpush3.bf16.msra.mxu1 %v1551_v38 }
 0x259   :  { %1553 = vmatprep.subr.bf16.mxu1 %v1846_v63 }
 0x25c   :  { %1555 = vmatpush3.bf16.msra.mxu1 %v1554_v41 }
 0x25d   :  { %1556 = vmatprep.subr.bf16.mxu1 %v1846_v63 }
 0x260   :  { %1558 = vmatpush3.bf16.msra.mxu1 %v1557_v44 }
 0x261   :  { %1559 = vmatprep.subr.bf16.mxu1 %v1846_v63 }
 0x264   :  { %1561 = vmatpush3.bf16.msra.mxu1 %v1560_v47 }
 0x267   :  { %1504 = vmatmul.mubr.f32.vlgmr.msra.gmra.mrb[14].mxu1 %v1047_v48 }
 0x31a   :  { %v1451_v49 = vpop.f32.mrb[12].mxu1 }
 0x31b   :  { %v1452_v50 = vpop.f32.mrb[13].mxu1 }
 0x31c   :  { %v1453_v51 = vadd.f32 %v1452_v50, %v1451_v49 }
 0x31e   :  { %v1170_v55 = vadd.f32 %v1453_v51, %v1374_v53 }
 0x33a   :  { %v1239_v57 = vpop.f32.mrb[14].mxu1 }
 0x33b   :  { %v1240_v60 = vadd.f32 %v1239_v57, %v1170_v55  ;;  %v1505_v62 = vpop.f32.mrb[15].mxu1 }
 0x33d   :  { %v1245_v63 = vmax.f32 %v1240_v60, -20.0 }
 0x33f   :  { %v1246_v1 = vmin.f32 %v1245_v63, 2.0 }
 0x341   :  { %v1253_v2 = vsel %vm1252_vm3, %v1246_v1, %v1240_v60 }
 0x342   :  { %1254 = vst [vmem:[#allocation10] sm:$0xff] %v1253_v2 }
 0x343   :  { %1816 = shalt.err (!%p1813_p8)
}
 0x344   :  { %s1817_s18 = scalar_lea.hbm %s2014_s8, 128 }
 0x345   :  { %p1818_p9 = scmp.ne.s32.totalorder %s2014_s8, %s1817_s18  ;;  %p1821_p10 = scmp.lt.u32.totalorder %s1817_s18, %s2014_s8 }
 0x347   :  { %p1823_p11 = pnand %p1821_p10, %p1818_p9 }
 0x349   :  { %1826 = shalt.err (!%p1823_p11)
}
 0x34a   :  { %1264 = dma.vmem_to_hbm [thread:$0]  %s1262_s17, 128, %s2014_s8, [#allocation4]  }
 0x34b   :  { %1833 = dma.done.wait [#allocation4], 128  }
 0x34c   :  { %1834 = vsyncadd [#allocation4], 4294967168 }
 0x34d   :  { %1268 = vsyncpa [#allocation3], 1 }
 0x34e   :  { %1269 = vsyncpa [#allocation6], 1 }
 0x34f   :  { %1270 = vsyncpa [#allocation9], 1 }
 0x350   :  { %1271 = vsyncpa [#allocation4], 1 }

</bundles_post_ra>
